<compile_context>
chip_gen: v7x
topology: tpu7x:2x2x1
jax: 0.10.0
libtpu: 0.0.40
codegen_flags: <defaults>
</compile_context>

<pallas_src>
import jax
import jax.numpy as jnp
from jax.experimental import pallas as pl
from jax.experimental.pallas import tpu as pltpu

NEG_SLOPE = 0.01  # torch.nn.LeakyReLU default


def _leaky(v):
    return jnp.where(v > 0, v, NEG_SLOPE * v)


def _round_up(v, m):
    return ((v + m - 1) // m) * m


def _vmem_capacity_bytes():
    """Per-core VMEM capacity; conservative 64 MiB (v7x per-TC) fallback."""
    try:
        info = pltpu.get_tpu_info()
        for name in ("vmem_capacity_bytes", "vmem_bytes", "vmem_size_bytes"):
            v = getattr(info, name, None)
            if v:
                return int(v)
    except Exception:
        pass
    return 64 << 20


def _tile_vmem_bytes(tb, in_dim, time_dim, hidden, out_pad):
    """Estimated VMEM footprint for one grid step (with double buffering)."""
    # streamed, double-buffered blocks: x (bf16), time_v (f32), out (bf16)
    stream = 2 * (tb * in_dim * 2 + tb * time_dim * 4 + tb * out_pad * 2)
    # resident weights (constant index_map, default 2 buffers each; tiny here)
    weights = 2 * (in_dim * hidden * 2 + hidden * 4 + 2 * time_dim * hidden * 4
                   + 6 * hidden * 4 + hidden * out_pad * 2 + out_pad * 4)
    # generous allowance for in-kernel f32 temporaries (h, s_th/s_al, thr/alpha, diff)
    temps = 6 * tb * hidden * 4
    return stream + weights + temps


# ---------------------------------------------------------------------------
# Kernel
# ---------------------------------------------------------------------------
def time_relu_classifier_kernel(
    x_ref,      # (TB, input_dim)   bf16 VMEM
    t_ref,      # (TB, time_dim)    f32  VMEM
    w1_ref,     # (input_dim, H)    bf16 VMEM
    b1_ref,     # (1, H)            f32  VMEM
    wth0_ref,   # (time_dim, H)     f32  VMEM  wm0 replicated across H lanes
    wal0_ref,   # (time_dim, H)     f32  VMEM  wa0 replicated across H lanes
    trows_ref,  # (6, H)            f32  VMEM  rows [bm0, wm1, bm1, ba0, wa1, ba1]
    w2_ref,     # (H, out_pad)      bf16 VMEM
    b2_ref,     # (1, out_pad)      f32  VMEM
    out_ref,    # (TB, out_pad)     bf16 VMEM
):
    # fc_1: bf16 operands on the MXU, f32 accumulation.
    h = jnp.dot(x_ref[...], w1_ref[...],
                preferred_element_type=jnp.float32) + b1_ref[...]          # (TB, H)

    # TimeReLU (leaky=True, deep=False): lane-dense over H (no (TB,1)-lane vregs).
    t = t_ref[...]
    s_th = _leaky(jnp.dot(t, wth0_ref[...], preferred_element_type=jnp.float32)
                  + trows_ref[0:1, :])                                     # (TB, H)
    s_al = _leaky(jnp.dot(t, wal0_ref[...], preferred_element_type=jnp.float32)
                  + trows_ref[3:4, :])                                     # (TB, H)
    thresholds = s_th * trows_ref[1:2, :] + trows_ref[2:3, :]              # (TB, H)
    alphas     = s_al * trows_ref[4:5, :] + trows_ref[5:6, :]              # (TB, H)

    diff = h - thresholds
    h = jnp.where(h > thresholds, diff, alphas * diff)                     # (TB, H)

    # fc_2 into the lane-dense padded slab; store bf16 (halves output HBM stream).
    out = jnp.dot(h.astype(jnp.bfloat16), w2_ref[...],
                  preferred_element_type=jnp.float32) + b2_ref[...]
    out_ref[...] = out.astype(out_ref.dtype)


# ---------------------------------------------------------------------------
# Wrapper
# ---------------------------------------------------------------------------
def time_relu_classifier(x, time_v, kp):
    """x: (B, input_dim) f32, time_v: (B, time_dim) f32, kp: prepare_params() dict.
    Returns f32 (B, out_dim) logits."""
    B, in_dim = x.shape
    time_dim = time_v.shape[1]
    hidden = kp["w1_bf16"].shape[1]
    out_pad = kp["w2p_bf16"].shape[1]
    out_dim = kp["out_dim"]

    # --- batch tiling: big tiles (grid-step overhead dominates this small kernel),
    # per-chip VMEM-derived cap, TB multiple of 16, >= 2 (even) steps for v7x TCs.
    vmem_cap = _vmem_capacity_bytes()
    tb_cap = 2048
    while tb_cap > 64 and _tile_vmem_bytes(tb_cap, in_dim, time_dim, hidden,
                                           out_pad) > 0.45 * vmem_cap:
        tb_cap //= 2

    n_steps = max(1, -(-B // tb_cap))
    if B >= 32:
        if n_steps == 1:
            n_steps = 2            # both v7x TensorCores get a grid step
        elif n_steps % 2:
            n_steps += 1           # balanced across the 2 TCs
    TB = _round_up(max(-(-B // n_steps), 1), 16)
    grid_n = -(-B // TB)
    Bp = grid_n * TB

    if Bp != B:
        x = jnp.pad(x, ((0, Bp - B), (0, 0)))
        time_v = jnp.pad(time_v, ((0, Bp - B), (0, 0)))
    x = x.astype(jnp.bfloat16)     # stream x as bf16 (halves the #2 HBM stream)

    est = _tile_vmem_bytes(TB, in_dim, time_dim, hidden, out_pad)
    vmem_limit = int(min(0.7 * vmem_cap, max(32 << 20, 2 * est)))

    flops = 2 * Bp * (in_dim * hidden + hidden * out_pad + 2 * time_dim * hidden)
    bytes_accessed = (
        Bp * in_dim * 2 + Bp * time_dim * 4 + Bp * out_pad * 2            # streams
        + kp["w1_bf16"].size * 2 + kp["w2p_bf16"].size * 2                # bf16 weights
        + (kp["b1"].size + kp["b2p"].size + kp["wth0"].size
           + kp["wal0"].size + kp["trows"].size) * 4)
    cost = pl.CostEstimate(flops=flops, transcendentals=0,
                           bytes_accessed=bytes_accessed)

    out = pl.pallas_call(
        time_relu_classifier_kernel,
        out_shape=jax.ShapeDtypeStruct((Bp, out_pad), jnp.bfloat16),
        grid=(grid_n,),
        in_specs=[
            pl.BlockSpec((TB, in_dim), lambda i: (i, 0)),          # x (tiled, bf16)
            pl.BlockSpec((TB, time_dim), lambda i: (i, 0)),        # time_v (tiled)
            pl.BlockSpec((in_dim, hidden), lambda i: (0, 0)),      # w1 (resident)
            pl.BlockSpec((1, hidden), lambda i: (0, 0)),           # b1
            pl.BlockSpec((time_dim, hidden), lambda i: (0, 0)),    # wth0 (replicated)
            pl.BlockSpec((time_dim, hidden), lambda i: (0, 0)),    # wal0 (replicated)
            pl.BlockSpec((6, hidden), lambda i: (0, 0)),           # trelu rows
            pl.BlockSpec((hidden, out_pad), lambda i: (0, 0)),     # w2 (padded)
            pl.BlockSpec((1, out_pad), lambda i: (0, 0)),          # b2 (padded)
        ],
        out_specs=pl.BlockSpec((TB, out_pad), lambda i: (i, 0)),
        compiler_params=pltpu.CompilerParams(
            dimension_semantics=("parallel",),
            vmem_limit_bytes=vmem_limit),
        cost_estimate=cost,
    )(x, time_v, kp["w1_bf16"], kp["b1"], kp["wth0"], kp["wal0"],
      kp["trows"], kp["w2p_bf16"], kp["b2p"])

    return out[:B, :out_dim].astype(jnp.float32)


# ---------------------------------------------------------------------------
# Parameters
# ---------------------------------------------------------------------------
def init_params(key, input_dim, out_dim, time_dim, hidden=256):
    """Deterministic synthetic init (PyTorch-style uniform +-1/sqrt(fan_in)),
    stored in the natural (in, out) layout."""
    ks = jax.random.split(key, 12)

    def lin(kw, kb, fan_in, fan_out):
        bound = 1.0 / jnp.sqrt(fan_in)
        w = jax.random.uniform(kw, (fan_in, fan_out), jnp.float32, -bound, bound)
        b = jax.random.uniform(kb, (1, fan_out), jnp.float32, -bound, bound)
        return w, b

    w1, b1 = lin(ks[0], ks[1], input_dim, hidden)        # fc_1
    wm0, bm0 = lin(ks[2], ks[3], time_dim, 1)            # model_0
    wa0, ba0 = lin(ks[4], ks[5], time_dim, 1)            # model_alpha_0
    wm1, bm1 = lin(ks[6], ks[7], 1, hidden)              # model_1 (lazy-init in torch)
    wa1, ba1 = lin(ks[8], ks[9], 1, hidden)              # model_alpha_1
    w2, b2 = lin(ks[10], ks[11], hidden, out_dim)        # fc_2

    return dict(w1=w1, b1=b1, wm0=wm0, bm0=bm0, wm1=wm1, bm1=bm1,
                wa0=wa0, ba0=ba0, wa1=wa1, ba1=ba1, w2=w2, b2=b2)


def prepare_params(p):
    """Pack / pad / replicate / cast the raw f32 params into kernel layout. Do once."""
    hidden = p["w1"].shape[1]
    time_dim = p["wm0"].shape[0]
    out_dim = p["w2"].shape[1]
    out_pad = _round_up(out_dim, 128)                    # lane-dense output slab

    w2p = jnp.zeros((hidden, out_pad), jnp.float32).at[:, :out_dim].set(p["w2"])
    b2p = jnp.zeros((1, out_pad), jnp.float32).at[:, :out_dim].set(p["b2"])

    # Replicate the scalar-producing TimeReLU weights/biases across all H lanes so
    # the kernel stays lane-dense (no (TB,1) vregs, no lane broadcasts).
    wth0 = jnp.asarray(jnp.broadcast_to(p["wm0"], (time_dim, hidden)))
    wal0 = jnp.asarray(jnp.broadcast_to(p["wa0"], (time_dim, hidden)))
    trows = jnp.concatenate([
        jnp.broadcast_to(p["bm0"].reshape(1, 1), (1, hidden)),
        p["wm1"], p["bm1"],
        jnp.broadcast_to(p["ba0"].reshape(1, 1), (1, hidden)),
        p["wa1"], p["ba1"],
    ], axis=0)                                           # (6, hidden)

    return dict(
        w1_bf16=p["w1"].astype(jnp.bfloat16),
        b1=p["b1"],
        wth0=wth0, wal0=wal0, trows=trows,
        w2p_bf16=w2p.astype(jnp.bfloat16),
        b2p=b2p,
        out_dim=out_dim,
    )


# ---------------------------------------------------------------------------
# Pure-JAX references
# ---------------------------------------------------------------------------
def reference_forward(x, time_v, p, bf16_matmul=False):
    cast = (lambda a: a.astype(jnp.bfloat16)) if bf16_matmul else (lambda a: a)
    h = jnp.dot(cast(x), cast(p["w1"]), preferred_element_type=jnp.float32) + p["b1"]
    s_th = _leaky(time_v @ p["wm0"] + p["bm0"])
    thresholds = s_th * p["wm1"] + p["bm1"]
    s_al = _leaky(time_v @ p["wa0"] + p["ba0"])
    alphas = s_al * p["wa1"] + p["ba1"]
    diff = h - thresholds
    h = jnp.where(h > thresholds, diff, alphas * diff)
    return jnp.dot(cast(h), cast(p["w2"]), preferred_element_type=jnp.float32) + p["b2"]


if __name__ == "__main__":
    B, INPUT_DIM, OUT_DIM, TIME_DIM = 2, 32, 10, 8

    key = jax.random.PRNGKey(0)
    kx, kt, kparam = jax.random.split(key, 3)
    x = jax.random.normal(kx, (B, INPUT_DIM), jnp.float32)
    time_v = jax.random.normal(kt, (B, TIME_DIM), jnp.float32)

    raw_params = init_params(kparam, INPUT_DIM, OUT_DIM, TIME_DIM)
    kernel_params = prepare_params(raw_params)

    out = time_relu_classifier(x, time_v, kernel_params)
    out = jax.block_until_ready(out)
    assert out.shape == (B, OUT_DIM)
    assert bool(jnp.all(jnp.isfinite(out)))

    # Check vs a reference using the same bf16-operand / f32-accumulate matmuls,
    # with its final logits rounded to bf16 to match the kernel's output dtype.
    ref_bf16 = reference_forward(x, time_v, raw_params, bf16_matmul=True)
    ref_bf16 = ref_bf16.astype(jnp.bfloat16).astype(jnp.float32)
    assert jnp.allclose(out, ref_bf16, atol=3e-2, rtol=3e-2), "mismatch vs bf16 reference"

    # Looser sanity check vs the full-f32 PyTorch-equivalent forward.
    ref_f32 = reference_forward(x, time_v, raw_params, bf16_matmul=False)
    assert jnp.allclose(out, ref_f32, atol=8e-2, rtol=8e-2), "mismatch vs f32 reference"

    print("KERNEL_OK")
</pallas_src>

<mosaic_0001>
module attributes {stable_mosaic.version = 11 : i64} {
  func.func @time_relu_classifier_kernel(%arg0: i32, %arg1: memref<16x32xbf16, #tpu.memory_space<vmem>>, %arg2: memref<16x8xf32, #tpu.memory_space<vmem>>, %arg3: memref<32x256xbf16, #tpu.memory_space<vmem>>, %arg4: memref<1x256xf32, #tpu.memory_space<vmem>>, %arg5: memref<8x256xf32, #tpu.memory_space<vmem>>, %arg6: memref<8x256xf32, #tpu.memory_space<vmem>>, %arg7: memref<6x256xf32, #tpu.memory_space<vmem>>, %arg8: memref<256x128xbf16, #tpu.memory_space<vmem>>, %arg9: memref<1x128xf32, #tpu.memory_space<vmem>>, %arg10: memref<16x128xbf16, #tpu.memory_space<vmem>>) attributes {dimension_semantics = [#tpu.dimension_semantics<parallel>], iteration_bounds = array<i64: 1>, scalar_prefetch = 0 : i64, scratch_operands = 0 : i64, tpu.core_type = #tpu.core_type<tc>, window_params = [{transform_indices = @transform_0, window_bounds = array<i64: 16, 32>}, {transform_indices = @transform_1, window_bounds = array<i64: 16, 8>}, {pipeline_mode = #tpu.pipeline_mode<synchronous>, transform_indices = @transform_2, window_bounds = array<i64: 32, 256>}, {pipeline_mode = #tpu.pipeline_mode<synchronous>, transform_indices = @transform_3, window_bounds = array<i64: 1, 256>}, {pipeline_mode = #tpu.pipeline_mode<synchronous>, transform_indices = @transform_4, window_bounds = array<i64: 8, 256>}, {pipeline_mode = #tpu.pipeline_mode<synchronous>, transform_indices = @transform_5, window_bounds = array<i64: 8, 256>}, {pipeline_mode = #tpu.pipeline_mode<synchronous>, transform_indices = @transform_6, window_bounds = array<i64: 6, 256>}, {pipeline_mode = #tpu.pipeline_mode<synchronous>, transform_indices = @transform_7, window_bounds = array<i64: 256, 128>}, {pipeline_mode = #tpu.pipeline_mode<synchronous>, transform_indices = @transform_8, window_bounds = array<i64: 1, 128>}, {transform_indices = @transform_9, window_bounds = array<i64: 16, 128>}]} {
    %c0 = arith.constant 0 : index
    %c0_0 = arith.constant 0 : index
    %0 = vector.load %arg1[%c0, %c0_0] : memref<16x32xbf16, #tpu.memory_space<vmem>>, vector<16x32xbf16>
    %c0_1 = arith.constant 0 : index
    %c0_2 = arith.constant 0 : index
    %1 = vector.load %arg3[%c0_1, %c0_2] : memref<32x256xbf16, #tpu.memory_space<vmem>>, vector<32x256xbf16>
    %cst = arith.constant dense<0.000000e+00> : vector<16x256xf32>
    %2 = tpu.matmul %0, %1, %cst {dimension_numbers = #tpu.dot_dimension_numbers<[1], [0], [0], [1], [0, 0, 1, 1], [], []>} : vector<16x32xbf16>, vector<32x256xbf16>, vector<16x256xf32> -> vector<16x256xf32>
    %c0_3 = arith.constant 0 : index
    %c0_4 = arith.constant 0 : index
    %3 = vector.load %arg4[%c0_3, %c0_4] : memref<1x256xf32, #tpu.memory_space<vmem>>, vector<1x256xf32>
    %4 = vector.broadcast %3 : vector<1x256xf32> to vector<16x256xf32>
    %5 = arith.addf %2, %4 : vector<16x256xf32>
    %c0_5 = arith.constant 0 : index
    %c0_6 = arith.constant 0 : index
    %6 = vector.load %arg2[%c0_5, %c0_6] : memref<16x8xf32, #tpu.memory_space<vmem>>, vector<16x8xf32>
    %c0_7 = arith.constant 0 : index
    %c0_8 = arith.constant 0 : index
    %7 = vector.load %arg5[%c0_7, %c0_8] : memref<8x256xf32, #tpu.memory_space<vmem>>, vector<8x256xf32>
    %cst_9 = arith.constant dense<0.000000e+00> : vector<16x256xf32>
    %8 = tpu.matmul %6, %7, %cst_9 {dimension_numbers = #tpu.dot_dimension_numbers<[1], [0], [0], [1], [0, 0, 1, 1], [], []>} : vector<16x8xf32>, vector<8x256xf32>, vector<16x256xf32> -> vector<16x256xf32>
    %c0_10 = arith.constant 0 : index
    %c0_11 = arith.constant 0 : index
    %9 = vector.load %arg7[%c0_10, %c0_11] : memref<6x256xf32, #tpu.memory_space<vmem>>, vector<1x256xf32>
    %10 = vector.broadcast %9 : vector<1x256xf32> to vector<16x256xf32>
    %11 = arith.addf %8, %10 : vector<16x256xf32>
    %cst_12 = arith.constant 0.000000e+00 : f32
    %12 = vector.broadcast %cst_12 : f32 to vector<16x256xf32>
    %13 = arith.cmpf ogt, %11, %12 : vector<16x256xf32>
    %cst_13 = arith.constant 0.00999999977 : f32
    %14 = vector.broadcast %cst_13 : f32 to vector<16x256xf32>
    %15 = arith.mulf %14, %11 : vector<16x256xf32>
    %16 = arith.select %13, %11, %15 : vector<16x256xi1>, vector<16x256xf32>
    %c0_14 = arith.constant 0 : index
    %c0_15 = arith.constant 0 : index
    %17 = vector.load %arg6[%c0_14, %c0_15] : memref<8x256xf32, #tpu.memory_space<vmem>>, vector<8x256xf32>
    %cst_16 = arith.constant dense<0.000000e+00> : vector<16x256xf32>
    %18 = tpu.matmul %6, %17, %cst_16 {dimension_numbers = #tpu.dot_dimension_numbers<[1], [0], [0], [1], [0, 0, 1, 1], [], []>} : vector<16x8xf32>, vector<8x256xf32>, vector<16x256xf32> -> vector<16x256xf32>
    %c3 = arith.constant 3 : index
    %c0_17 = arith.constant 0 : index
    %19 = vector.load %arg7[%c3, %c0_17] : memref<6x256xf32, #tpu.memory_space<vmem>>, vector<1x256xf32>
    %20 = vector.broadcast %19 : vector<1x256xf32> to vector<16x256xf32>
    %21 = arith.addf %18, %20 : vector<16x256xf32>
    %cst_18 = arith.constant 0.000000e+00 : f32
    %22 = vector.broadcast %cst_18 : f32 to vector<16x256xf32>
    %23 = arith.cmpf ogt, %21, %22 : vector<16x256xf32>
    %cst_19 = arith.constant 0.00999999977 : f32
    %24 = vector.broadcast %cst_19 : f32 to vector<16x256xf32>
    %25 = arith.mulf %24, %21 : vector<16x256xf32>
    %26 = arith.select %23, %21, %25 : vector<16x256xi1>, vector<16x256xf32>
    %c1 = arith.constant 1 : index
    %c0_20 = arith.constant 0 : index
    %27 = vector.load %arg7[%c1, %c0_20] : memref<6x256xf32, #tpu.memory_space<vmem>>, vector<1x256xf32>
    %28 = vector.broadcast %27 : vector<1x256xf32> to vector<16x256xf32>
    %29 = arith.mulf %16, %28 : vector<16x256xf32>
    %c2 = arith.constant 2 : index
    %c0_21 = arith.constant 0 : index
    %30 = vector.load %arg7[%c2, %c0_21] : memref<6x256xf32, #tpu.memory_space<vmem>>, vector<1x256xf32>
    %31 = vector.broadcast %30 : vector<1x256xf32> to vector<16x256xf32>
    %32 = arith.addf %29, %31 : vector<16x256xf32>
    %c4 = arith.constant 4 : index
    %c0_22 = arith.constant 0 : index
    %33 = vector.load %arg7[%c4, %c0_22] : memref<6x256xf32, #tpu.memory_space<vmem>>, vector<1x256xf32>
    %34 = vector.broadcast %33 : vector<1x256xf32> to vector<16x256xf32>
    %35 = arith.mulf %26, %34 : vector<16x256xf32>
    %c5 = arith.constant 5 : index
    %c0_23 = arith.constant 0 : index
    %36 = vector.load %arg7[%c5, %c0_23] : memref<6x256xf32, #tpu.memory_space<vmem>>, vector<1x256xf32>
    %37 = vector.broadcast %36 : vector<1x256xf32> to vector<16x256xf32>
    %38 = arith.addf %35, %37 : vector<16x256xf32>
    %39 = arith.subf %5, %32 : vector<16x256xf32>
    %40 = arith.cmpf ogt, %5, %32 : vector<16x256xf32>
    %41 = arith.mulf %38, %39 : vector<16x256xf32>
    %42 = arith.select %40, %39, %41 : vector<16x256xi1>, vector<16x256xf32>
    %43 = arith.truncf %42 : vector<16x256xf32> to vector<16x256xbf16>
    %c0_24 = arith.constant 0 : index
    %c0_25 = arith.constant 0 : index
    %44 = vector.load %arg8[%c0_24, %c0_25] : memref<256x128xbf16, #tpu.memory_space<vmem>>, vector<256x128xbf16>
    %cst_26 = arith.constant dense<0.000000e+00> : vector<16x128xf32>
    %45 = tpu.matmul %43, %44, %cst_26 {dimension_numbers = #tpu.dot_dimension_numbers<[1], [0], [0], [1], [0, 0, 1, 1], [], []>} : vector<16x256xbf16>, vector<256x128xbf16>, vector<16x128xf32> -> vector<16x128xf32>
    %c0_27 = arith.constant 0 : index
    %c0_28 = arith.constant 0 : index
    %46 = vector.load %arg9[%c0_27, %c0_28] : memref<1x128xf32, #tpu.memory_space<vmem>>, vector<1x128xf32>
    %47 = vector.broadcast %46 : vector<1x128xf32> to vector<16x128xf32>
    %48 = arith.addf %45, %47 : vector<16x128xf32>
    %49 = arith.truncf %48 : vector<16x128xf32> to vector<16x128xbf16>
    %c0_29 = arith.constant 0 : index
    %c0_30 = arith.constant 0 : index
    %50 = vector.load %arg10[%c0_29, %c0_30] : memref<16x128xbf16, #tpu.memory_space<vmem>>, vector<16x128xbf16>
    tpu.vector_store %arg10[%c0_29, %c0_30], %49 {strides = array<i32>} : memref<16x128xbf16, #tpu.memory_space<vmem>>, vector<16x128xbf16>,
    return
  }
  func.func @transform_0(%arg0: i32) -> (i32, i32) {
    %c0_i32 = arith.constant 0 : i32
    %c0_i32_0 = arith.constant 0 : i32
    return %arg0, %c0_i32 : i32, i32
  }
  func.func @transform_1(%arg0: i32) -> (i32, i32) {
    %c0_i32 = arith.constant 0 : i32
    %c0_i32_0 = arith.constant 0 : i32
    return %arg0, %c0_i32 : i32, i32
  }
  func.func @transform_2(%arg0: i32) -> (i32, i32) {
    %c0_i32 = arith.constant 0 : i32
    %c0_i32_0 = arith.constant 0 : i32
    %c0_i32_1 = arith.constant 0 : i32
    return %c0_i32, %c0_i32_0 : i32, i32
  }
  func.func @transform_3(%arg0: i32) -> (i32, i32) {
    %c0_i32 = arith.constant 0 : i32
    %c0_i32_0 = arith.constant 0 : i32
    %c0_i32_1 = arith.constant 0 : i32
    return %c0_i32, %c0_i32_0 : i32, i32
  }
  func.func @transform_4(%arg0: i32) -> (i32, i32) {
    %c0_i32 = arith.constant 0 : i32
    %c0_i32_0 = arith.constant 0 : i32
    %c0_i32_1 = arith.constant 0 : i32
    return %c0_i32, %c0_i32_0 : i32, i32
  }
  func.func @transform_5(%arg0: i32) -> (i32, i32) {
    %c0_i32 = arith.constant 0 : i32
    %c0_i32_0 = arith.constant 0 : i32
    %c0_i32_1 = arith.constant 0 : i32
    return %c0_i32, %c0_i32_0 : i32, i32
  }
  func.func @transform_6(%arg0: i32) -> (i32, i32) {
    %c0_i32 = arith.constant 0 : i32
    %c0_i32_0 = arith.constant 0 : i32
    %c0_i32_1 = arith.constant 0 : i32
    return %c0_i32, %c0_i32_0 : i32, i32
  }
  func.func @transform_7(%arg0: i32) -> (i32, i32) {
    %c0_i32 = arith.constant 0 : i32
    %c0_i32_0 = arith.constant 0 : i32
    %c0_i32_1 = arith.constant 0 : i32
    return %c0_i32, %c0_i32_0 : i32, i32
  }
  func.func @transform_8(%arg0: i32) -> (i32, i32) {
    %c0_i32 = arith.constant 0 : i32
    %c0_i32_0 = arith.constant 0 : i32
    %c0_i32_1 = arith.constant 0 : i32
    return %c0_i32, %c0_i32_0 : i32, i32
  }
  func.func @transform_9(%arg0: i32) -> (i32, i32) {
    %c0_i32 = arith.constant 0 : i32
    %c0_i32_0 = arith.constant 0 : i32
    return %arg0, %c0_i32 : i32, i32
  }
}

</mosaic_0001>

<bundles_post_ra>
// kernel: tpu_custom_call.1
= control target key start
LH: loop header
LB: loop body
LE: loop exit
PB: predicated region body
PF: predicated region fallthrough
CT: control target
= control target key end

     0   :  { %14 = vsyncpa [#allocation3], 0  ;;  %s1062_s0 = inlined_call_operand.hbm [shape: bf16[16,32], index: 0, kind: input, shape index: {}]   ;;  %s1063_s1 = inlined_call_operand.vmem [shape: f32[16,8], index: 1, kind: input, shape index: {}]   ;;  %s1064_s2 = inlined_call_operand.hbm [shape: bf16[32,256], index: 2, kind: input, shape index: {}]   ;;  %s1065_s3 = inlined_call_operand.vmem [shape: f32[1,256], index: 3, kind: input, shape index: {}]   ;;  %s1066_s4 = inlined_call_operand.vmem [shape: f32[8,256], index: 4, kind: input, shape index: {}]   ;;  %s1067_s5 = inlined_call_operand.vmem [shape: f32[8,256], index: 5, kind: input, shape index: {}]   ;;  %s1068_s6 = inlined_call_operand.hbm [shape: f32[6,256], index: 6, kind: input, shape index: {}]   ;;  %s1069_s7 = inlined_call_operand.hbm [shape: bf16[256,128], index: 7, kind: input, shape index: {}]   ;;  %s1070_s8 = inlined_call_operand.vmem [shape: f32[1,128], index: 8, kind: input, shape index: {}]   ;;  %s1071_s9 = inlined_call_operand.hbm [shape: bf16[16,128], index: 9, kind: output, shape index: {}]  }
   0x1   :  { %15 = vsyncpa [#allocation6], 0 }
   0x2   :  { %16 = vsyncpa [#allocation9], 0 }
   0x3   :  { %17 = vsyncpa [#allocation4], 0  ;;  %s894_s30 = smov [#allocation5]   ;;  %s776_s13 = scalar_lea.hbm %s1064_s2, 512 }
   0x4   :  { %s37_s10 = sshll.u32 %s894_s30, 4  ;;  %p777_p0 = scmp.ne.s32.totalorder %s1064_s2, %s776_s13  ;;  %s38_s10 = int_to_ptr.vmem [resolvable:$true] %s37_s10 }
   0x5   :  { %p780_p1 = scmp.lt.u32.totalorder %s776_s13, %s1064_s2 }
   0x7   :  { %p782_p2 = pnand %p780_p1, %p777_p0 }
   0x9   :  { %785 = shalt.err (!%p782_p2)
}
   0xa   :  { %s786_s18 = scalar_lea.vmem %s38_s10, 512  ;;  %p791_p4 = scmp.lt.s32.totalorder %s38_s10, %s38_s10 }
   0xb   :  { %p787_p3 = scmp.ne.s32.totalorder %s38_s10, %s786_s18  ;;  %p792_p5 = scmp.lt.s32.totalorder %s786_s18, %s786_s18 }
   0xd   :  { %p793_p6 = por %p792_p5, %p791_p4 }
   0xf   :  { %p794_p7 = pnand %p793_p6, %p787_p3 }
  0x11   :  { %797 = shalt.err (!%p794_p7)
}
  0x12   :  { %s895_s19 = smov 128   ;;  %s896_s20 = smov 8  }
  0x13   :  { %43 = dma.hbm_to_vmem [thread:$0]  %s1064_s2, 512, %s38_s10, [#allocation6], %s895_s19, %s895_s19, %s896_s20  }
  0x14   :  { %s897_s23 = smov [#allocation2]   ;;  %s798_s27 = scalar_lea.hbm %s1062_s0, 128 }
  0x15   :  { %s23_s24 = sshll.u32 %s897_s23, 4  ;;  %p799_p8 = scmp.ne.s32.totalorder %s1062_s0, %s798_s27  ;;  %s24_s24 = int_to_ptr.vmem [resolvable:$true] %s23_s24 }
  0x16   :  { %p802_p9 = scmp.lt.u32.totalorder %s798_s27, %s1062_s0 }
  0x18   :  { %p804_p10 = pnand %p802_p9, %p799_p8 }
  0x1a   :  { %807 = shalt.err (!%p804_p10)
}
  0x1b   :  { %s808_s12 = scalar_lea.vmem %s24_s24, 128  ;;  %p813_p12 = scmp.lt.s32.totalorder %s24_s24, %s24_s24 }
  0x1c   :  { %p809_p11 = scmp.ne.s32.totalorder %s24_s24, %s808_s12  ;;  %p814_p13 = scmp.lt.s32.totalorder %s808_s12, %s808_s12 }
  0x1e   :  { %p815_p0 = por %p814_p13, %p813_p12 }
  0x20   :  { %p816_p1 = pnand %p815_p0, %p809_p11 }
  0x22   :  { %819 = shalt.err (!%p816_p1)
}
  0x23   :  { %s898_s2 = smov 64   ;;  %s899_s10 = smov 4  }
  0x24   :  { %29 = dma.hbm_to_vmem [thread:$0]  %s1062_s0, 128, %s24_s24, [#allocation3], %s898_s2, %s898_s2, %s899_s10  }
  0x25   :  { %s900_s15 = smov [#allocation7]   ;;  %s901_s17 = smov [#allocation8]  }
  0x26   :  { %s56_s16 = sshll.u32 %s900_s15, 4  ;;  %s65_s18 = sshll.u32 %s901_s17, 4  ;;  %s57_s16 = int_to_ptr.vmem [resolvable:$true] %s56_s16  ;;  %s982_s18 = int_to_ptr.vmem [resolvable:$true] %s65_s18 }
  0x27   :  { %s820_s21 = scalar_lea.hbm %s1068_s6, 256 }
  0x28   :  { %p821_p2 = scmp.ne.s32.totalorder %s1068_s6, %s820_s21  ;;  %p824_p3 = scmp.lt.u32.totalorder %s820_s21, %s1068_s6 }
  0x2a   :  { %p826_p4 = pnand %p824_p3, %p821_p2 }
  0x2c   :  { %829 = shalt.err (!%p826_p4)
}
  0x2d   :  { %s830_s0 = scalar_lea.vmem %s57_s16, 256  ;;  %p835_p6 = scmp.lt.s32.totalorder %s57_s16, %s57_s16 }
  0x2e   :  { %p831_p5 = scmp.ne.s32.totalorder %s57_s16, %s830_s0  ;;  %p836_p7 = scmp.lt.s32.totalorder %s830_s0, %s830_s0 }
  0x30   :  { %p837_p8 = por %p836_p7, %p835_p6 }
  0x32   :  { %p838_p9 = pnand %p837_p8, %p831_p5 }
  0x34   :  { %841 = shalt.err (!%p838_p9)
}
  0x35   :  { %59 = dma.hbm_to_vmem [thread:$0]  %s1068_s6, 256, %s57_s16, [#allocation6]  }
  0x36   :  { %s842_s30 = scalar_lea.hbm %s1069_s7, 2048 }
  0x37   :  { %p843_p10 = scmp.ne.s32.totalorder %s1069_s7, %s842_s30  ;;  %p846_p11 = scmp.lt.u32.totalorder %s842_s30, %s1069_s7 }
  0x39   :  { %p848_p12 = pnand %p846_p11, %p843_p10 }
  0x3b   :  { %851 = shalt.err (!%p848_p12)
}
  0x3c   :  { %s852_s15 = scalar_lea.vmem %s982_s18, 2048  ;;  %p857_p0 = scmp.lt.s32.totalorder %s982_s18, %s982_s18 }
  0x3d   :  { %p853_p13 = scmp.ne.s32.totalorder %s982_s18, %s852_s15  ;;  %p858_p1 = scmp.lt.s32.totalorder %s852_s15, %s852_s15 }
  0x3f   :  { %p859_p2 = por %p858_p1, %p857_p0 }
  0x41   :  { %p860_p3 = pnand %p859_p2, %p853_p13 }
  0x43   :  { %863 = shalt.err (!%p860_p3)
}
  0x44   :  { %71 = dma.hbm_to_vmem [thread:$0]  %s1069_s7, 2048, %s982_s18, [#allocation9], %s898_s2, %s898_s2, %s899_s10  }
  0x45   :  { %886 = dma.done.wait [#allocation3], 128  }
  0x46   :  { %887 = vsyncadd [#allocation3], 4294967168 }
  0x47   :  { %888 = dma.done.wait [#allocation6], 768  }
  0x48   :  { %889 = vsyncadd [#allocation6], 4294966528 }
  0x49   :  { %890 = dma.done.wait [#allocation9], 2048  }
  0x4a   :  { %891 = vsyncadd [#allocation9], 4294965248  ;;  %v902_v0 = vmov 0   ;;  %v753_v1 = vld [vmem:[#allocation5 + $0x4] ss:$8 sps:$4 sm:$0xff]   ;;  %v759_v5 = vld [vmem:[#allocation2] sm:$0xff]   ;;  %v95_v29 = vlaneseq }
  0x4b   :  { %166 = vmatprep.mubr.bf16.mxu1 %v902_v0  ;;  %v755_v2 = vld [vmem:[#allocation5] ss:$8 sps:$4 sm:$0xff]   ;;  %134 = vmatprep.subr.bf16.mxu1 %v753_v1  ;;  %v756_v3 = vld [vmem:[#allocation5 + $0x14] ss:$8 sps:$4 sm:$0xff]   ;;  %v758_v4 = vld [vmem:[#allocation5 + $0x10] ss:$8 sps:$4 sm:$0xff]  }
  0x4c   :  { %135 = vmatpush1.bf16.msra.mxu1 %v755_v2  ;;  %vm130_vm0 = vcmask 261120   ;;  %v180_v6 = vld [vmem:[%s1066_s4 + $0x8] sm:$0xff]  ;;  %v179_v7 = vld [vmem:[%s1066_s4] sm:$0xff]  ;;  %vm193_vm1 = vcmask 64512   ;;  %v903_v9 = vmov 0.0   ;;  %v760_v13 = vld [vmem:[#allocation8 + $0x40] sm:$0xff]  }
  0x4d   :  { %136 = vmatprep.subr.bf16.mxu1 %v756_v3  ;;  %v290_v8 = vld [vmem:[%s1067_s5 + $0x8] sm:$0xff]  ;;  %v177_v10 = vld [vmem:[%s1063_s1] sm:$0xff]  ;;  %v761_v14 = vld [vmem:[#allocation8] sm:$0xff]   ;;  %720 = vmatprep.subr.bf16.mxu0 %v760_v13  ;;  %v96_v30 = vshrl.u32 %v95_v29, 7  ;;  %s904_s27 = smov [#allocation10]  }
  0x4e   :  { %v289_v11 = vld [vmem:[%s1067_s5] sm:$0xff]  ;;  %v178_v12 = vld [vmem:[%s1063_s1 + $0x8] sm:$0xff]  ;;  %721 = vmatpush3.bf16.msra.mxu0 %v761_v14  ;;  %v766_v19 = vld [vmem:[#allocation8 + $0x58] sm:$0xff]   ;;  %s670_s28 = sshll.u32 %s904_s27, 4  ;;  %s671_s28 = int_to_ptr.vmem [resolvable:$true] %s670_s28 }
  0x4f   :  { %v762_v15 = vld [vmem:[#allocation8 + $0x48] sm:$0xff]   ;;  %v764_v17 = vld [vmem:[#allocation8 + $0x50] sm:$0xff]   ;;  %v767_v20 = vld [vmem:[#allocation8 + $0x18] sm:$0xff]   ;;  %v97_v35 = vsub.s32 0, %v96_v30  ;;  %v101_v37 = vsub.s32 1, %v96_v30  ;;  %s864_s29 = scalar_lea.vmem %s671_s28, 128  ;;  %p869_p5 = scmp.lt.s32.totalorder %s671_s28, %s671_s28 }
  0x50   :  { %137 = vmatpush1.bf16.msra.mxu1 %v758_v4  ;;  %v763_v16 = vld [vmem:[#allocation8 + $0x8] sm:$0xff]   ;;  %722 = vmatprep.subr.bf16.mxu0 %v762_v15  ;;  %v765_v18 = vld [vmem:[#allocation8 + $0x10] sm:$0xff]   ;;  %v768_v21 = vld [vmem:[#allocation8 + $0x60] sm:$0xff]   ;;  %p865_p4 = scmp.ne.s32.totalorder %s671_s28, %s864_s29  ;;  %p870_p6 = scmp.lt.s32.totalorder %s864_s29, %s864_s29 }
  0x51   :  { %200 = vmatprep.subr.mxu1 %v180_v6  ;;  %v769_v22 = vld [vmem:[#allocation8 + $0x20] sm:$0xff]   ;;  %v770_v23 = vld [vmem:[#allocation8 + $0x68] sm:$0xff]   ;;  %v772_v25 = vld [vmem:[#allocation8 + $0x70] sm:$0xff]  }
  0x52   :  { %723 = vmatpush3.bf16.msra.mxu0 %v763_v16  ;;  %v771_v24 = vld [vmem:[#allocation8 + $0x28] sm:$0xff]   ;;  %v773_v26 = vld [vmem:[#allocation8 + $0x30] sm:$0xff]   ;;  %v774_v27 = vld [vmem:[#allocation8 + $0x78] sm:$0xff]   ;;  %p871_p7 = por %p870_p6, %p869_p5 }
  0x53   :  { %689 = vmatmul.mubr.msk.bf16.vlgmr.msra.gmra.mrb[0].mxu1 %vm130_vm0, %v759_v5  ;;  %724 = vmatprep.subr.bf16.mxu0 %v764_v17  ;;  %v775_v28 = vld [vmem:[#allocation8 + $0x38] sm:$0xff]   ;;  %v93_v39 = vld [vmem:[%s1065_s3] sm:$0x3] }
  0x54   :  { %201 = vmatpush1.msra.mxu1 %v179_v7  ;;  %264 = vmatprep.mubr.f32.mxu1 %v903_v9  ;;  %v181_v34 = vld [vmem:[#allocation7] ss:$8 sm:$0x3]  ;;  %v394_v40 = vld [vmem:[#allocation7 + $0x1] ss:$8 sm:$0x3]  ;;  %v98_v45 = vrot.slane %v93_v39, %v97_v35  ;;  %v102_v46 = vrot.slane %v93_v39, %v101_v37  ;;  %p872_p8 = pnand %p871_p7, %p865_p4 }
  0x55   :  { %304 = vmatprep.subr.mxu1 %v290_v8  ;;  %v186_v38 = vrot.slane %v181_v34, %v97_v35  ;;  %v190_v41 = vrot.slane %v181_v34, %v101_v37  ;;  %v411_v42 = vld [vmem:[#allocation7 + $0x2] ss:$8 sm:$0x3]  ;;  %v292_v43 = vld [vmem:[#allocation7 + $0x3] ss:$8 sm:$0x3]  ;;  %v399_v48 = vrot.slane %v394_v40, %v97_v35  ;;  %v403_v53 = vrot.slane %v394_v40, %v101_v37 }
  0x56   :  { %725 = vmatpush3.bf16.msra.mxu0 %v765_v18  ;;  %v428_v50 = vld [vmem:[#allocation7 + $0x4] ss:$8 sm:$0x3]  ;;  %v416_v51 = vrot.slane %v411_v42, %v97_v35  ;;  %v297_v54 = vrot.slane %v292_v43, %v97_v35  ;;  %v445_v55 = vld [vmem:[#allocation7 + $0x5] ss:$8 sm:$0x3]  ;;  %v301_v57 = vrot.slane %v292_v43, %v101_v37  ;;  %v420_v58 = vrot.slane %v411_v42, %v101_v37 }
  0x57   :  { %726 = vmatprep.subr.bf16.mxu0 %v766_v19  ;;  %v433_v61 = vrot.slane %v428_v50, %v97_v35  ;;  %v437_v62 = vrot.slane %v428_v50, %v101_v37  ;;  %v450_v2 = vrot.slane %v445_v55, %v97_v35  ;;  %v454_v3 = vrot.slane %v445_v55, %v101_v37 }
  0x5a   :  { %727 = vmatpush3.bf16.msra.mxu0 %v767_v20 }
  0x5b   :  { %690 = vmatmul.mubr.msk.f32.vlgmr.msra.gmra.mrb[4].mxu1 %vm193_vm1, %v177_v10  ;;  %728 = vmatprep.subr.bf16.mxu0 %v768_v21 }
  0x5c   :  { %305 = vmatpush1.msra.mxu1 %v289_v11  ;;  %270 = vmatprep.mubr.f32.mxu1 %v903_v9 }
  0x5e   :  { %729 = vmatpush3.bf16.msra.mxu0 %v769_v22 }
  0x5f   :  { %691 = vmatmul.mubr.msk.f32.gmra.mrb[6].mxu1 %vm193_vm1, %v178_v12  ;;  %730 = vmatprep.subr.bf16.mxu0 %v770_v23 }
  0x60   :  { %368 = vmatprep.mubr.f32.mxu1 %v903_v9 }
  0x62   :  { %731 = vmatpush3.bf16.msra.mxu0 %v771_v24 }
  0x63   :  { %692 = vmatmul.mubr.msk.f32.vlgmr.msra.gmra.mrb[8].mxu1 %vm193_vm1, %v177_v10  ;;  %732 = vmatprep.subr.bf16.mxu0 %v772_v25 }
  0x64   :  { %374 = vmatprep.mubr.f32.mxu1 %v903_v9 }
  0x66   :  { %733 = vmatpush3.bf16.msra.mxu0 %v773_v26 }
  0x67   :  { %693 = vmatmul.mubr.msk.f32.gmra.mrb[10].mxu1 %vm193_vm1, %v178_v12  ;;  %734 = vmatprep.subr.bf16.mxu0 %v774_v27 }
  0x6a   :  { %735 = vmatpush3.bf16.msra.mxu0 %v775_v28 }
 0x126   :  { %v168_v31 = vpop.f32.mrb[0].mxu1 }
 0x127   :  { %v170_v32 = vpop.f32.mrb[1].mxu1  ;;  %v169_v4 = vadd.f32 %v168_v31, %v98_v45 }
 0x128   :  { %v172_v33 = vpop.f32.mrb[2].mxu1  ;;  %v171_v8 = vadd.f32 %v170_v32, %v102_v46 }
 0x129   :  { %v174_v36 = vpop.f32.mrb[3].mxu1  ;;  %v173_v11 = vadd.f32 %v172_v33, %v98_v45 }
 0x12a   :  { %v175_v15 = vadd.f32 %v174_v36, %v102_v46 }
 0x12e   :  { %v266_v44 = vpop.f32.mrb[4].mxu1 }
 0x12f   :  { %v267_v47 = vadd.f32 %v266_v44, %v186_v38  ;;  %v268_v49 = vpop.f32.mrb[5].mxu1 }
 0x130   :  { %v269_v52 = vadd.f32 %v268_v49, %v190_v41 }
 0x131   :  { %vm277_vm2 = vcmp.gt.f32.partialorder %v267_v47, 0.0  ;;  %v281_v56 = vmul.f32 0.01, %v267_v47 }
 0x132   :  { %vm278_vm3 = vcmp.gt.f32.partialorder %v269_v52, 0.0  ;;  %v282_v59 = vmul.f32 0.01, %v269_v52  ;;  %v272_v60 = vpop.f32.mrb[6].mxu1 }
 0x133   :  { %v285_v63 = vsel %vm277_vm2, %v267_v47, %v281_v56  ;;  %v273_v0 = vadd.f32 %v272_v60, %v186_v38  ;;  %v274_v1 = vpop.f32.mrb[7].mxu1 }
 0x134   :  { %v406_v5 = vmul.f32 %v399_v48, %v285_v63  ;;  %v286_v6 = vsel %vm278_vm3, %v269_v52, %v282_v59  ;;  %v275_v7 = vadd.f32 %v274_v1, %v190_v41 }
 0x135   :  { %v407_v9 = vmul.f32 %v403_v53, %v286_v6  ;;  %vm279_vm4 = vcmp.gt.f32.partialorder %v273_v0, 0.0  ;;  %v283_v10 = vmul.f32 0.01, %v273_v0 }
 0x136   :  { %v423_v12 = vadd.f32 %v416_v51, %v406_v5  ;;  %vm280_vm5 = vcmp.gt.f32.partialorder %v275_v7, 0.0  ;;  %v284_v13 = vmul.f32 0.01, %v275_v7  ;;  %v370_v14 = vpop.f32.mrb[8].mxu1 }
 0x137   :  { %v287_v16 = vsel %vm279_vm4, %v273_v0, %v283_v10  ;;  %v371_v17 = vadd.f32 %v370_v14, %v297_v54  ;;  %v372_v18 = vpop.f32.mrb[9].mxu1  ;;  %v424_v19 = vadd.f32 %v420_v58, %v407_v9  ;;  %v694_v0 = vld [vmem:[%s1070_s8] ss:$0 sm:$0xff] }
 0x138   :  { %v408_v20 = vmul.f32 %v399_v48, %v287_v16  ;;  %v288_v21 = vsel %vm280_vm5, %v275_v7, %v284_v13  ;;  %v373_v22 = vadd.f32 %v372_v18, %v301_v57  ;;  %v461_v23 = vsub.f32 %v169_v4, %v423_v12 }
 0x139   :  { %v409_v24 = vmul.f32 %v403_v53, %v288_v21  ;;  %vm381_vm6 = vcmp.gt.f32.partialorder %v371_v17, 0.0  ;;  %v385_v25 = vmul.f32 0.01, %v371_v17  ;;  %v462_v26 = vsub.f32 %v171_v8, %v424_v19 }
 0x13a   :  { %v425_v27 = vadd.f32 %v416_v51, %v408_v20  ;;  %vm382_vm7 = vcmp.gt.f32.partialorder %v373_v22, 0.0  ;;  %v386_v28 = vmul.f32 0.01, %v373_v22  ;;  %v376_v29 = vpop.f32.mrb[10].mxu1  ;;  %vm466_vm8 = vcmp.gt.f32.partialorder %v171_v8, %v424_v19 }
 0x13b   :  { %v389_v30 = vsel %vm381_vm6, %v371_v17, %v385_v25  ;;  %v377_v31 = vadd.f32 %v376_v29, %v297_v54  ;;  %v378_v32 = vpop.f32.mrb[11].mxu1  ;;  %v426_v33 = vadd.f32 %v420_v58, %v409_v24  ;;  %vm465_vm9 = vcmp.gt.f32.partialorder %v169_v4, %v423_v12 }
 0x13c   :  { %v440_v34 = vmul.f32 %v433_v61, %v389_v30  ;;  %v390_v35 = vsel %vm382_vm7, %v373_v22, %v386_v28  ;;  %v379_v36 = vadd.f32 %v378_v32, %v301_v57  ;;  %v463_v37 = vsub.f32 %v173_v11, %v425_v27 }
 0x13d   :  { %v441_v38 = vmul.f32 %v437_v62, %v390_v35  ;;  %vm383_vm10 = vcmp.gt.f32.partialorder %v377_v31, 0.0  ;;  %v387_v39 = vmul.f32 0.01, %v377_v31  ;;  %v464_v40 = vsub.f32 %v175_v15, %v426_v33 }
 0x13e   :  { %v457_v41 = vadd.f32 %v450_v2, %v440_v34  ;;  %vm384_vm11 = vcmp.gt.f32.partialorder %v379_v36, 0.0  ;;  %v388_v42 = vmul.f32 0.01, %v379_v36  ;;  %vm468_vm12 = vcmp.gt.f32.partialorder %v175_v15, %v426_v33 }
 0x13f   :  { %v391_v43 = vsel %vm383_vm10, %v377_v31, %v387_v39  ;;  %v458_v44 = vadd.f32 %v454_v3, %v441_v38  ;;  %vm467_vm13 = vcmp.gt.f32.partialorder %v173_v11, %v425_v27 }
 0x140   :  { %v442_v45 = vmul.f32 %v433_v61, %v391_v43  ;;  %v392_v46 = vsel %vm384_vm11, %v379_v36, %v388_v42  ;;  %v469_v47 = vmul.f32 %v461_v23, %v457_v41 }
 0x141   :  { %v443_v48 = vmul.f32 %v437_v62, %v392_v46  ;;  %v470_v49 = vmul.f32 %v462_v26, %v458_v44 }
 0x142   :  { %v459_v50 = vadd.f32 %v450_v2, %v442_v45  ;;  %v473_v51 = vsel %vm465_vm9, %v461_v23, %v469_v47 }
 0x143   :  { %v460_v52 = vadd.f32 %v454_v3, %v443_v48  ;;  %v474_v53 = vsel %vm466_vm8, %v462_v26, %v470_v49 }
 0x144   :  { %v471_v54 = vmul.f32 %v463_v37, %v459_v50 }
 0x145   :  { %v472_v55 = vmul.f32 %v464_v40, %v460_v52 }
 0x146   :  { %v475_v56 = vsel %vm467_vm13, %v463_v37, %v471_v54 }
 0x147   :  { %v476_v57 = vsel %vm468_vm12, %v464_v40, %v472_v55  ;;  %v477_v58 = vpack.c.bf16 %v475_v56, %v473_v51 }
 0x148   :  { %v478_v59 = vpack.c.bf16 %v476_v57, %v474_v53 }
 0x14a   :  { %646 = vmatprep.mubr.bf16.mxu0 %v478_v59 }
 0x14b   :  { %647 = vmatmul.mubr.bf16.vlgmr.msra.gmra.mrb[0].mxu0 %v477_v58 }
 0x21e   :  { %v736_v60 = vpop.f32.mrb[0].mxu0 }
 0x21f   :  { %v737_v61 = vpop.f32.mrb[1].mxu0 }
 0x220   :  { %v738_v63 = vadd.f32 %v737_v61, %v736_v60  ;;  %v739_v62 = vpop.f32.mrb[2].mxu0 }
 0x221   :  { %v740_v1 = vpop.f32.mrb[3].mxu0 }
 0x222   :  { %v741_v2 = vadd.f32 %v740_v1, %v739_v62  ;;  %v649_v3 = vadd.f32 %v738_v63, %v694_v0 }
 0x224   :  { %v652_v4 = vadd.f32 %v741_v2, %v694_v0 }
 0x226   :  { %v718_v5 = vpack.c.bf16 %v652_v4, %v649_v3 }
 0x228   :  { %719 = vst [vmem:[#allocation10] sm:$0xff] %v718_v5  }
 0x229   :  { %875 = shalt.err (!%p872_p8)
}
 0x22a   :  { %s876_s8 = scalar_lea.hbm %s1071_s9, 128 }
 0x22b   :  { %p877_p9 = scmp.ne.s32.totalorder %s1071_s9, %s876_s8  ;;  %p880_p10 = scmp.lt.u32.totalorder %s876_s8, %s1071_s9 }
 0x22d   :  { %p882_p11 = pnand %p880_p10, %p877_p9 }
 0x22f   :  { %885 = shalt.err (!%p882_p11)
}
 0x230   :  { %676 = dma.vmem_to_hbm [thread:$0]  %s671_s28, 128, %s1071_s9, [#allocation4], %s898_s2, %s898_s2, %s899_s10  }
 0x231   :  { %892 = dma.done.wait [#allocation4], 128  }
 0x232   :  { %893 = vsyncadd [#allocation4], 4294967168 }
 0x233   :  { %680 = vsyncpa [#allocation3], 1 }
 0x234   :  { %681 = vsyncpa [#allocation6], 1 }
 0x235   :  { %682 = vsyncpa [#allocation9], 1 }
 0x236   :  { %683 = vsyncpa [#allocation4], 1 }

</bundles_post_ra>
